<compile_context>
chip_gen: v7x
topology: tpu7x:2x2x1
jax: 0.10.0
libtpu: 0.0.40
codegen_flags: <defaults>
</compile_context>

<pallas_src>
import math
from functools import partial

import jax
import jax.numpy as jnp
from jax.experimental import pallas as pl
from jax.experimental.pallas import tpu as pltpu


GAMMA = 0.5 * math.pi / 180.0
LANE = 128


def _round_up(x, m):
    return (x + m - 1) // m * m


# ----------------------------------------------------------------------------
# Kernel
# ----------------------------------------------------------------------------
def diffusion_mlp_kernel(
    x_ref,      # (TILE_B, input_dim)   f32
    time_ref,   # (TILE_B, 1)           f32
    w1x_ref,    # (input_dim, H1p)      f32   rows of W1 that multiply x_t
    emb_ref,    # (8, H1p)              f32   row0=W1 cos-row, row1=W1 sin-row, row2=b1, rest 0
    w2_ref,     # (H1p, H2p)            f32
    b2_ref,     # (1, H2p)              f32
    w3_ref,     # (H2p, OUTp)           f32
    b3_ref,     # (1, OUTp)             f32
    out_ref,    # (TILE_B, OUTp)        f32
):
    t_col = time_ref[...]                      # (TILE_B, 1)
    time_cos = jnp.cos(t_col * GAMMA)          # EUP transcendental, computed once per tile
    time_sin = jnp.sin(t_col * GAMMA)

    emb = emb_ref[...]                         # (8, H1p), resident in VMEM
    w1_cos = emb[0:1, :]                       # (1, H1p)
    w1_sin = emb[1:2, :]
    b1 = emb[2:3, :]

    # Layer 1: Linear(input_dim + 2, H1) with the concat folded in.
    h1 = jnp.dot(x_ref[...], w1x_ref[...], preferred_element_type=jnp.float32)
    h1 = h1 + time_cos * w1_cos + time_sin * w1_sin + b1
    h1 = jnp.maximum(h1, 0.0)                  # ReLU (padded lanes stay exactly 0)

    # Layer 2: Linear(H1, H2) + ReLU
    h2 = jnp.dot(h1, w2_ref[...], preferred_element_type=jnp.float32) + b2_ref[...]
    h2 = jnp.maximum(h2, 0.0)

    # Layer 3: Linear(H2, out_dim)
    out = jnp.dot(h2, w3_ref[...], preferred_element_type=jnp.float32) + b3_ref[...]
    out_ref[...] = out.astype(out_ref.dtype)


# ----------------------------------------------------------------------------
# Wrapper
# ----------------------------------------------------------------------------
def pack_params(params):
    """Zero-pad feature dims to multiples of 128 (lane-dense) and merge the
    time-embedding rows + b1 into one (8, H1p) slab. Exactness is preserved:
    padded weights/biases are zero, so padded lanes carry exactly 0 through
    ReLU and contribute nothing downstream."""
    in_dim, H1 = params["w1x"].shape
    H2 = params["w2"].shape[1]
    OUT = params["w3"].shape[1]
    H1p, H2p, OUTp = _round_up(H1, LANE), _round_up(H2, LANE), _round_up(OUT, LANE)

    w1x = jnp.pad(params["w1x"], ((0, 0), (0, H1p - H1)))
    emb = jnp.zeros((8, H1p), jnp.float32)
    emb = emb.at[0, :H1].set(params["w1c"][0])
    emb = emb.at[1, :H1].set(params["w1s"][0])
    emb = emb.at[2, :H1].set(params["b1"][0])

    w2 = jnp.pad(params["w2"], ((0, H1p - H1), (0, H2p - H2)))
    b2 = jnp.pad(params["b2"], ((0, 0), (0, H2p - H2)))
    w3 = jnp.pad(params["w3"], ((0, H2p - H2), (0, OUTp - OUT)))
    b3 = jnp.pad(params["b3"], ((0, 0), (0, OUTp - OUT)))

    return {"w1x": w1x, "emb": emb, "w2": w2, "b2": b2, "w3": w3, "b3": b3,
            "out_dim": OUT}


@partial(jax.jit, static_argnames=("out_dim",))
def _diffusion_forward_padded(x_t, time_col, packed, out_dim):
    B, input_dim = x_t.shape
    H1p = packed["w1x"].shape[1]
    H2p = packed["w2"].shape[1]
    OUTp = packed["w3"].shape[1]

    # Batch tiling: multiple of 8 sublanes, capped at 512 rows per tile
    # (activations per tile ~ TILE_B*(in+1+H1p+H2p+OUTp)*4B << VMEM even
    # double-buffered, so v7x's smaller 64 MiB VMEM is never a concern).
    TILE_B = min(512, _round_up(B, 8))
    B_pad = _round_up(B, TILE_B)
    if B_pad != B:
        x_t = jnp.pad(x_t, ((0, B_pad - B), (0, 0)))
        time_col = jnp.pad(time_col, ((0, B_pad - B), (0, 0)))

    grid = (B_pad // TILE_B,)

    tile_spec = lambda shape: pl.BlockSpec(shape, lambda i: (i, 0))
    resident = lambda shape: pl.BlockSpec(shape, lambda i: (0, 0))  # weights stay in VMEM

    out_padded = pl.pallas_call(
        diffusion_mlp_kernel,
        out_shape=jax.ShapeDtypeStruct((B_pad, OUTp), jnp.float32),
        grid=grid,
        in_specs=[
            tile_spec((TILE_B, input_dim)),     # x_t tile (pipelined)
            tile_spec((TILE_B, 1)),             # time tile (pipelined)
            resident((input_dim, H1p)),         # W1_x
            resident((8, H1p)),                 # [cos-row, sin-row, b1] slab
            resident((H1p, H2p)),               # W2
            resident((1, H2p)),                 # b2
            resident((H2p, OUTp)),              # W3
            resident((1, OUTp)),                # b3
        ],
        out_specs=tile_spec((TILE_B, OUTp)),
        compiler_params=pltpu.CompilerParams(
            dimension_semantics=("parallel",),   # megacore split on v7x
            vmem_limit_bytes=32 * 1024 * 1024,
        ),
    )(
        x_t, time_col,
        packed["w1x"], packed["emb"],
        packed["w2"], packed["b2"],
        packed["w3"], packed["b3"],
    )

    return out_padded[:B, :out_dim]


def diffusion_forward(x_t, time, packed):
    """x_t: (B, input_dim) f32; time: (B,) or (B,1) f32; packed from pack_params."""
    x_t = x_t.astype(jnp.float32)
    time_col = jnp.reshape(time, (-1, 1)).astype(jnp.float32)
    return _diffusion_forward_padded(x_t, time_col, packed, packed["out_dim"])


# ----------------------------------------------------------------------------
# Params / reference
# ----------------------------------------------------------------------------
def init_params(key, input_dim, hidden1_dim, hidden2_dim, output_dim):
    """Deterministic init mimicking PyTorch Linear default (uniform +-1/sqrt(fan_in))."""
    def linear(key, fan_in, fan_out):
        kw, kb = jax.random.split(key)
        bound = 1.0 / math.sqrt(fan_in)
        w = jax.random.uniform(kw, (fan_in, fan_out), jnp.float32, -bound, bound)
        b = jax.random.uniform(kb, (1, fan_out), jnp.float32, -bound, bound)
        return w, b

    k1, k2, k3 = jax.random.split(key, 3)
    w1_full, b1 = linear(k1, input_dim + 2, hidden1_dim)   # rows: [x (input_dim), cos, sin]
    w2, b2 = linear(k2, hidden1_dim, hidden2_dim)
    w3, b3 = linear(k3, hidden2_dim, output_dim)

    return {
        "w1x": w1_full[:input_dim, :],
        "w1c": w1_full[input_dim:input_dim + 1, :],
        "w1s": w1_full[input_dim + 1:input_dim + 2, :],
        "b1": b1,
        "w2": w2,
        "b2": b2,
        "w3": w3,
        "b3": b3,
    }


def reference_forward(x_t, time, params):
    """Pure-JAX reference reproducing the PyTorch forward exactly."""
    time_col = jnp.reshape(time, (-1, 1))
    time_cos = jnp.cos(time_col * GAMMA)
    time_sin = jnp.sin(time_col * GAMMA)
    w1_full = jnp.concatenate([params["w1x"], params["w1c"], params["w1s"]], axis=0)
    inp = jnp.concatenate([x_t, time_cos, time_sin], axis=-1)
    h1 = jnp.maximum(inp @ w1_full + params["b1"], 0.0)
    h2 = jnp.maximum(h1 @ params["w2"] + params["b2"], 0.0)
    return h2 @ params["w3"] + params["b3"]


# TODO(synk): noising()/sample_time()/noise_scheduling() are training/sampling
# utilities outside forward(); they are plain elementwise JAX and not kernelized.

if __name__ == "__main__":
    # Small shapes consistent with the module's forward.
    time_steps = 10
    batch = 8
    input_dim = 4
    hidden1_dim = 32
    hidden2_dim = 32
    output_dim = 4

    key = jax.random.PRNGKey(0)
    kx, kt, kp = jax.random.split(key, 3)

    params = init_params(kp, input_dim, hidden1_dim, hidden2_dim, output_dim)
    packed = pack_params(params)   # pad/merge once; reused across calls / timesteps

    # x_t: noised sample (B, input_dim); time: integers in [1, time_steps] as floats
    x_t = jax.random.normal(kx, (batch, input_dim), jnp.float32)
    time = jax.random.randint(kt, (batch,), 1, time_steps + 1).astype(jnp.float32)

    out = diffusion_forward(x_t, time, packed)
    out = jax.block_until_ready(out)

    # Sanity check against the pure-JAX reference.
    ref = reference_forward(x_t, time, params)
    assert out.shape == (batch, output_dim)
    assert jnp.allclose(out, ref, atol=1e-5, rtol=1e-5), "mismatch vs reference"

    print("KERNEL_OK")
</pallas_src>

<mosaic_0001>
module attributes {stable_mosaic.version = 11 : i64} {
  func.func @diffusion_mlp_kernel(%arg0: i32, %arg1: memref<8x4xf32, #tpu.memory_space<vmem>>, %arg2: memref<8x1xf32, #tpu.memory_space<vmem>>, %arg3: memref<4x128xf32, #tpu.memory_space<vmem>>, %arg4: memref<8x128xf32, #tpu.memory_space<vmem>>, %arg5: memref<128x128xf32, #tpu.memory_space<vmem>>, %arg6: memref<1x128xf32, #tpu.memory_space<vmem>>, %arg7: memref<128x128xf32, #tpu.memory_space<vmem>>, %arg8: memref<1x128xf32, #tpu.memory_space<vmem>>, %arg9: memref<8x128xf32, #tpu.memory_space<vmem>>) attributes {dimension_semantics = [#tpu.dimension_semantics<parallel>], iteration_bounds = array<i64: 1>, scalar_prefetch = 0 : i64, scratch_operands = 0 : i64, tpu.core_type = #tpu.core_type<tc>, window_params = [{transform_indices = @transform_0, window_bounds = array<i64: 8, 4>}, {transform_indices = @transform_1, window_bounds = array<i64: 8, 1>}, {pipeline_mode = #tpu.pipeline_mode<synchronous>, transform_indices = @transform_2, window_bounds = array<i64: 4, 128>}, {pipeline_mode = #tpu.pipeline_mode<synchronous>, transform_indices = @transform_3, window_bounds = array<i64: 8, 128>}, {pipeline_mode = #tpu.pipeline_mode<synchronous>, transform_indices = @transform_4, window_bounds = array<i64: 128, 128>}, {pipeline_mode = #tpu.pipeline_mode<synchronous>, transform_indices = @transform_5, window_bounds = array<i64: 1, 128>}, {pipeline_mode = #tpu.pipeline_mode<synchronous>, transform_indices = @transform_6, window_bounds = array<i64: 128, 128>}, {pipeline_mode = #tpu.pipeline_mode<synchronous>, transform_indices = @transform_7, window_bounds = array<i64: 1, 128>}, {transform_indices = @transform_8, window_bounds = array<i64: 8, 128>}]} {
    %c0 = arith.constant 0 : index
    %c0_0 = arith.constant 0 : index
    %0 = vector.load %arg2[%c0, %c0_0] : memref<8x1xf32, #tpu.memory_space<vmem>>, vector<8x1xf32>
    %cst = arith.constant 0.00872664619 : f32
    %1 = vector.broadcast %cst : f32 to vector<8x1xf32>
    %2 = arith.mulf %0, %1 : vector<8x1xf32>
    %3 = math.cos %2 : vector<8x1xf32>
    %cst_1 = arith.constant 0.00872664619 : f32
    %4 = vector.broadcast %cst_1 : f32 to vector<8x1xf32>
    %5 = arith.mulf %0, %4 : vector<8x1xf32>
    %6 = math.sin %5 : vector<8x1xf32>
    %c0_2 = arith.constant 0 : index
    %c0_3 = arith.constant 0 : index
    %7 = vector.load %arg4[%c0_2, %c0_3] : memref<8x128xf32, #tpu.memory_space<vmem>>, vector<8x128xf32>
    %8 = vector.extract_strided_slice %7 {offsets = [0, 0], sizes = [1, 128], strides = [1, 1]} : vector<8x128xf32> to vector<1x128xf32>
    %9 = vector.extract_strided_slice %7 {offsets = [1, 0], sizes = [1, 128], strides = [1, 1]} : vector<8x128xf32> to vector<1x128xf32>
    %10 = vector.extract_strided_slice %7 {offsets = [2, 0], sizes = [1, 128], strides = [1, 1]} : vector<8x128xf32> to vector<1x128xf32>
    %c0_4 = arith.constant 0 : index
    %c0_5 = arith.constant 0 : index
    %11 = vector.load %arg1[%c0_4, %c0_5] : memref<8x4xf32, #tpu.memory_space<vmem>>, vector<8x4xf32>
    %c0_6 = arith.constant 0 : index
    %c0_7 = arith.constant 0 : index
    %12 = vector.load %arg3[%c0_6, %c0_7] : memref<4x128xf32, #tpu.memory_space<vmem>>, vector<4x128xf32>
    %cst_8 = arith.constant dense<0.000000e+00> : vector<8x128xf32>
    %13 = tpu.matmul %11, %12, %cst_8 {dimension_numbers = #tpu.dot_dimension_numbers<[1], [0], [0], [1], [0, 0, 1, 1], [], []>} : vector<8x4xf32>, vector<4x128xf32>, vector<8x128xf32> -> vector<8x128xf32>
    %14 = vector.broadcast %3 : vector<8x1xf32> to vector<8x128xf32>
    %15 = vector.broadcast %8 : vector<1x128xf32> to vector<8x128xf32>
    %16 = arith.mulf %14, %15 : vector<8x128xf32>
    %17 = arith.addf %13, %16 : vector<8x128xf32>
    %18 = vector.broadcast %6 : vector<8x1xf32> to vector<8x128xf32>
    %19 = vector.broadcast %9 : vector<1x128xf32> to vector<8x128xf32>
    %20 = arith.mulf %18, %19 : vector<8x128xf32>
    %21 = arith.addf %17, %20 : vector<8x128xf32>
    %22 = vector.broadcast %10 : vector<1x128xf32> to vector<8x128xf32>
    %23 = arith.addf %21, %22 : vector<8x128xf32>
    %cst_9 = arith.constant 0.000000e+00 : f32
    %24 = vector.broadcast %cst_9 : f32 to vector<8x128xf32>
    %25 = arith.maximumf %23, %24 : vector<8x128xf32>
    %c0_10 = arith.constant 0 : index
    %c0_11 = arith.constant 0 : index
    %26 = vector.load %arg5[%c0_10, %c0_11] : memref<128x128xf32, #tpu.memory_space<vmem>>, vector<128x128xf32>
    %cst_12 = arith.constant dense<0.000000e+00> : vector<8x128xf32>
    %27 = tpu.matmul %25, %26, %cst_12 {dimension_numbers = #tpu.dot_dimension_numbers<[1], [0], [0], [1], [0, 0, 1, 1], [], []>} : vector<8x128xf32>, vector<128x128xf32>, vector<8x128xf32> -> vector<8x128xf32>
    %c0_13 = arith.constant 0 : index
    %c0_14 = arith.constant 0 : index
    %28 = vector.load %arg6[%c0_13, %c0_14] : memref<1x128xf32, #tpu.memory_space<vmem>>, vector<1x128xf32>
    %29 = vector.broadcast %28 : vector<1x128xf32> to vector<8x128xf32>
    %30 = arith.addf %27, %29 : vector<8x128xf32>
    %cst_15 = arith.constant 0.000000e+00 : f32
    %31 = vector.broadcast %cst_15 : f32 to vector<8x128xf32>
    %32 = arith.maximumf %30, %31 : vector<8x128xf32>
    %c0_16 = arith.constant 0 : index
    %c0_17 = arith.constant 0 : index
    %33 = vector.load %arg7[%c0_16, %c0_17] : memref<128x128xf32, #tpu.memory_space<vmem>>, vector<128x128xf32>
    %cst_18 = arith.constant dense<0.000000e+00> : vector<8x128xf32>
    %34 = tpu.matmul %32, %33, %cst_18 {dimension_numbers = #tpu.dot_dimension_numbers<[1], [0], [0], [1], [0, 0, 1, 1], [], []>} : vector<8x128xf32>, vector<128x128xf32>, vector<8x128xf32> -> vector<8x128xf32>
    %c0_19 = arith.constant 0 : index
    %c0_20 = arith.constant 0 : index
    %35 = vector.load %arg8[%c0_19, %c0_20] : memref<1x128xf32, #tpu.memory_space<vmem>>, vector<1x128xf32>
    %36 = vector.broadcast %35 : vector<1x128xf32> to vector<8x128xf32>
    %37 = arith.addf %34, %36 : vector<8x128xf32>
    %c0_21 = arith.constant 0 : index
    %c0_22 = arith.constant 0 : index
    %38 = vector.load %arg9[%c0_21, %c0_22] : memref<8x128xf32, #tpu.memory_space<vmem>>, vector<8x128xf32>
    tpu.vector_store %arg9[%c0_21, %c0_22], %37 {strides = array<i32>} : memref<8x128xf32, #tpu.memory_space<vmem>>, vector<8x128xf32>,
    return
  }
  func.func @transform_0(%arg0: i32) -> (i32, i32) {
    %c0_i32 = arith.constant 0 : i32
    %c0_i32_0 = arith.constant 0 : i32
    return %arg0, %c0_i32 : i32, i32
  }
  func.func @transform_1(%arg0: i32) -> (i32, i32) {
    %c0_i32 = arith.constant 0 : i32
    %c0_i32_0 = arith.constant 0 : i32
    return %arg0, %c0_i32 : i32, i32
  }
  func.func @transform_2(%arg0: i32) -> (i32, i32) {
    %c0_i32 = arith.constant 0 : i32
    %c0_i32_0 = arith.constant 0 : i32
    %c0_i32_1 = arith.constant 0 : i32
    return %c0_i32, %c0_i32_0 : i32, i32
  }
  func.func @transform_3(%arg0: i32) -> (i32, i32) {
    %c0_i32 = arith.constant 0 : i32
    %c0_i32_0 = arith.constant 0 : i32
    %c0_i32_1 = arith.constant 0 : i32
    return %c0_i32, %c0_i32_0 : i32, i32
  }
  func.func @transform_4(%arg0: i32) -> (i32, i32) {
    %c0_i32 = arith.constant 0 : i32
    %c0_i32_0 = arith.constant 0 : i32
    %c0_i32_1 = arith.constant 0 : i32
    return %c0_i32, %c0_i32_0 : i32, i32
  }
  func.func @transform_5(%arg0: i32) -> (i32, i32) {
    %c0_i32 = arith.constant 0 : i32
    %c0_i32_0 = arith.constant 0 : i32
    %c0_i32_1 = arith.constant 0 : i32
    return %c0_i32, %c0_i32_0 : i32, i32
  }
  func.func @transform_6(%arg0: i32) -> (i32, i32) {
    %c0_i32 = arith.constant 0 : i32
    %c0_i32_0 = arith.constant 0 : i32
    %c0_i32_1 = arith.constant 0 : i32
    return %c0_i32, %c0_i32_0 : i32, i32
  }
  func.func @transform_7(%arg0: i32) -> (i32, i32) {
    %c0_i32 = arith.constant 0 : i32
    %c0_i32_0 = arith.constant 0 : i32
    %c0_i32_1 = arith.constant 0 : i32
    return %c0_i32, %c0_i32_0 : i32, i32
  }
  func.func @transform_8(%arg0: i32) -> (i32, i32) {
    %c0_i32 = arith.constant 0 : i32
    %c0_i32_0 = arith.constant 0 : i32
    return %arg0, %c0_i32 : i32, i32
  }
}

</mosaic_0001>

<bundles_post_ra>
// kernel: _diffusion_forward_padded.1
= control target key start
LH: loop header
LB: loop body
LE: loop exit
PB: predicated region body
PF: predicated region fallthrough
CT: control target
= control target key end

     0   :  { %13 = vsyncpa [#allocation3], 0  ;;  %s954_s0 = inlined_call_operand.vmem [shape: f32[8,4], index: 0, kind: input, shape index: {}]   ;;  %s955_s1 = inlined_call_operand.vmem [shape: f32[8,1], index: 1, kind: input, shape index: {}]   ;;  %s956_s2 = inlined_call_operand.vmem [shape: f32[4,128], index: 2, kind: input, shape index: {}]   ;;  %s957_s3 = inlined_call_operand.vmem [shape: f32[8,128], index: 3, kind: input, shape index: {}]   ;;  %s958_s4 = inlined_call_operand.hbm [shape: f32[128,128], index: 4, kind: input, shape index: {}]   ;;  %s959_s5 = inlined_call_operand.vmem [shape: f32[1,128], index: 5, kind: input, shape index: {}]   ;;  %s960_s6 = inlined_call_operand.hbm [shape: f32[128,128], index: 6, kind: input, shape index: {}]   ;;  %s961_s7 = inlined_call_operand.vmem [shape: f32[1,128], index: 7, kind: input, shape index: {}]   ;;  %s962_s8 = inlined_call_operand.vmem [shape: f32[8,128], index: 8, kind: output, shape index: {}]  }
   0x1   :  { %14 = vsyncpa [#allocation5], 0  ;;  %s810_s27 = smov [#allocation2]   ;;  %s762_s9 = scalar_lea.hbm %s958_s4, 2048 }
   0x2   :  { %s28_s28 = sshll.u32 %s810_s27, 4  ;;  %p763_p0 = scmp.ne.s32.totalorder %s958_s4, %s762_s9  ;;  %s29_s28 = int_to_ptr.vmem [resolvable:$true] %s28_s28 }
   0x3   :  { %p766_p1 = scmp.lt.u32.totalorder %s762_s9, %s958_s4 }
   0x5   :  { %p768_p2 = pnand %p766_p1, %p763_p0 }
   0x7   :  { %771 = shalt.err (!%p768_p2)
}
   0x8   :  { %s772_s14 = scalar_lea.vmem %s29_s28, 2048  ;;  %p777_p4 = scmp.lt.s32.totalorder %s29_s28, %s29_s28 }
   0x9   :  { %p773_p3 = scmp.ne.s32.totalorder %s29_s28, %s772_s14  ;;  %p778_p5 = scmp.lt.s32.totalorder %s772_s14, %s772_s14 }
   0xb   :  { %p779_p6 = por %p778_p5, %p777_p4 }
   0xd   :  { %p780_p7 = pnand %p779_p6, %p773_p3 }
   0xf   :  { %783 = shalt.err (!%p780_p7)
}
  0x10   :  { %s811_s15 = smov 128   ;;  %s812_s16 = smov 8  }
  0x11   :  { %34 = dma.hbm_to_vmem [thread:$0]  %s958_s4, 2048, %s29_s28, [#allocation3], %s811_s15, %s811_s15, %s812_s16  }
  0x12   :  { %s813_s19 = smov [#allocation4]   ;;  %s784_s23 = scalar_lea.hbm %s960_s6, 2048 }
  0x13   :  { %s42_s20 = sshll.u32 %s813_s19, 4  ;;  %p785_p8 = scmp.ne.s32.totalorder %s960_s6, %s784_s23  ;;  %s43_s20 = int_to_ptr.vmem [resolvable:$true] %s42_s20 }
  0x14   :  { %p788_p9 = scmp.lt.u32.totalorder %s784_s23, %s960_s6 }
  0x16   :  { %p790_p10 = pnand %p788_p9, %p785_p8 }
  0x18   :  { %793 = shalt.err (!%p790_p10)
}
  0x19   :  { %s794_s29 = scalar_lea.vmem %s43_s20, 2048  ;;  %p799_p12 = scmp.lt.s32.totalorder %s43_s20, %s43_s20 }
  0x1a   :  { %p795_p11 = scmp.ne.s32.totalorder %s43_s20, %s794_s29  ;;  %p800_p13 = scmp.lt.s32.totalorder %s794_s29, %s794_s29 }
  0x1c   :  { %p801_p0 = por %p800_p13, %p799_p12 }
  0x1e   :  { %p802_p1 = pnand %p801_p0, %p795_p11 }
  0x20   :  { %805 = shalt.err (!%p802_p1)
}
  0x21   :  { %48 = dma.hbm_to_vmem [thread:$0]  %s960_s6, 2048, %s43_s20, [#allocation5], %s811_s15, %s811_s15, %s812_s16  }
  0x22   :  { %806 = dma.done.wait [#allocation3], 2048  }
  0x23   :  { %807 = vsyncadd [#allocation3], 4294965248 }
  0x24   :  { %808 = dma.done.wait [#allocation5], 2048  }
  0x25   :  { %809 = vsyncadd [#allocation5], 4294965248  ;;  %v814_v0 = vmov 0.0   ;;  %vm815_vm0 = vmmov 0   ;;  %v816_v1 = vmov 0   ;;  %v817_v2 = vmov 0.0|0.0  }
  0x26   :  { %616 = vmatprep.subr.mxu0 %v814_v0  ;;  %618 = vmatprep.mubr.msk.f32.mxu0 %vm815_vm0, %v814_v0  ;;  %vm283_vm1 = vcmask 1043456   ;;  %vm279_vm2 = vcmask 31744   ;;  %v268_v3 = vld [vmem:[%s956_s2] sm:$0xf]  ;;  %v375_v8 = vld [vmem:[#allocation2 + $0x8] sm:$0xff]  ;;  %v376_v9 = vld [vmem:[#allocation2 + $0x10] sm:$0xff] }
  0x27   :  { %757 = vset.pattern.permute.xlu0 %v816_v1  ;;  %691 = vmatprep.subr.bf16.mxu1 %v817_v2  ;;  %v267_v4 = vld [vmem:[%s954_s0] sm:$0xff]  ;;  %v377_v11 = vld [vmem:[#allocation2 + $0x18] sm:$0xff]  ;;  %v379_v16 = vld [vmem:[#allocation2 + $0x28] sm:$0xff]  ;;  %v818_v32 = vmov 683565275  }
  0x28   :  { %653 = vmatprep.mubr.msk.f32.mxu1 %vm815_vm0, %v814_v0  ;;  %v57_v5 = vld [vmem:[%s955_s1] sm:$0xff]  ;;  %617 = vmatpush3.msk.msra.mxu0 %vm283_vm1, %v268_v3  ;;  %v695_v13 = vpack.c.bf16 %v377_v11, %v376_v9  ;;  %v380_v21 = vld [vmem:[#allocation2 + $0x30] sm:$0xff]  ;;  %v381_v22 = vld [vmem:[#allocation2 + $0x38] sm:$0xff]  ;;  %v819_v34 = vmov 2475754826  }
  0x29   :  { %v905_v6 = vmul.f32 0.008726646, %v57_v5  ;;  %v374_v7 = vld [vmem:[#allocation2] sm:$0xff]  ;;  %619 = vmatmul.mubr.msk.f32.vlgmr.msra.gmra.mrb[0].mxu0 %vm279_vm2, %v267_v4  ;;  %715 = vmatprep.subr.bf16.mxu0 %v817_v2  ;;  %v701_v25 = vpack.c.bf16 %v381_v22, %v380_v21  ;;  %v383_v28 = vld [vmem:[#allocation2 + $0x48] sm:$0xff]  ;;  %v820_v36 = vmov 2131351028  }
  0x2a   :  { %v692_v10 = vpack.c.bf16 %v375_v8, %v374_v7  ;;  %688 = vmatprep.mubr.msk.f32.mxu0 %vm815_vm0, %v814_v0  ;;  %v378_v15 = vld [vmem:[#allocation2 + $0x20] sm:$0xff]  ;;  %v821_v38 = vmov 2102212464   ;;  %v822_v40 = vmov 920167782  }
  0x2b   :  { %v62_v12 = vand.u32 2139095040, %v905_v6  ;;  %v59_v17 = vand.u32 2147483647, %v905_v6  ;;  %v698_v19 = vpack.c.bf16 %v379_v16, %v378_v15  ;;  %v382_v27 = vld [vmem:[#allocation2 + $0x40] sm:$0xff]  ;;  %v823_v48 = vmov 1326507024  }
  0x2c   :  { %693 = vmatpush3.bf16.msra.mxu1 %v692_v10  ;;  %v704_v42 = vpack.c.bf16 %v383_v28, %v382_v27  ;;  %vm61_vm10 = vcmp.lt.s32.totalorder %v905_v6, 0  ;;  %vm151_vm2 = vweird.f32 %v905_v6 }
  0x2d   :  { %v63_v14 = vshrl.u32 %v62_v12, 23  ;;  %694 = vmatprep.subr.bf16.mxu1 %v817_v2  ;;  %v66_v23 = vand.u32 8388607, %v59_v17  ;;  %vm60_vm11 = vcmp.le.f32.partialorder %v59_v17, 0.7853982 }
  0x2f   :  { %v568_v18 = vadd.s32 4294967169, %v63_v14  ;;  %v67_v29 = vor.u32 8388608, %v66_v23 }
  0x30   :  { %696 = vmatpush3.bf16.msra.mxu1 %v695_v13 }
  0x31   :  { %v69_v20 = vadd.s32 1, %v568_v18  ;;  %697 = vmatprep.subr.bf16.mxu1 %v817_v2  ;;  %v107_v50 = vshll.u32 %v67_v29, 8 }
  0x33   :  { %vm70_vm3 = vcmp.gt.s32.totalorder %v69_v20, 0 }
  0x34   :  { %v71_v24 = vsel %vm70_vm3, %v69_v20, 0  ;;  %699 = vmatpush3.bf16.msra.mxu1 %v698_v19 }
  0x35   :  { %v73_v26 = vand.u32 31, %v71_v24  ;;  %700 = vmatprep.subr.bf16.mxu1 %v817_v2  ;;  %v72_v30 = vshrl.u32 %v71_v24, 5 }
  0x37   :  { %v74_v31 = vsub.s32 32, %v73_v26  ;;  %v76_v33 = vshll.u32 %v818_v32, %v73_v26  ;;  %v79_v35 = vshll.u32 %v819_v34, %v73_v26  ;;  %v82_v37 = vshll.u32 %v820_v36, %v73_v26 }
  0x38   :  { %v85_v39 = vshll.u32 %v821_v38, %v73_v26  ;;  %v88_v41 = vshll.u32 %v822_v40, %v73_v26  ;;  %702 = vmatpush3.bf16.msra.mxu1 %v701_v25  ;;  %vm91_vm4 = vcmp.lt.s32.totalorder %v72_v30, 1  ;;  %vm94_vm5 = vcmp.lt.s32.totalorder %v72_v30, 4 }
  0x39   :  { %v75_v43 = vshrl.u32 %v818_v32, %v74_v31  ;;  %v77_v44 = vshrl.u32 %v819_v34, %v74_v31  ;;  %v80_v45 = vshrl.u32 %v820_v36, %v74_v31  ;;  %v83_v46 = vshrl.u32 %v821_v38, %v74_v31  ;;  %703 = vmatprep.subr.bf16.mxu1 %v817_v2 }
  0x3a   :  { %v86_v47 = vshrl.u32 %v822_v40, %v74_v31  ;;  %v89_v49 = vshrl.u32 %v823_v48, %v74_v31  ;;  %vm92_vm6 = vcmp.lt.s32.totalorder %v72_v30, 2  ;;  %vm93_vm7 = vcmp.lt.s32.totalorder %v72_v30, 3 }
  0x3b   :  { %v78_v51 = vor.u32 %v77_v44, %v76_v33  ;;  %v81_v52 = vor.u32 %v80_v45, %v79_v35  ;;  %v84_v53 = vor.u32 %v83_v46, %v82_v37 }
  0x3c   :  { %v87_v54 = vor.u32 %v86_v47, %v85_v39  ;;  %v90_v55 = vor.u32 %v89_v49, %v88_v41  ;;  %705 = vmatpush3.bf16.msra.mxu1 %v704_v42 }
  0x3d   :  { %v95_v56 = vsel %vm91_vm4, %v75_v43, %v78_v51  ;;  %v96_v57 = vsel %vm94_vm5, %v84_v53, 2102212464  ;;  %v99_v58 = vsel %vm91_vm4, %v78_v51, %v81_v52  ;;  %v103_v59 = vsel %vm91_vm4, %v81_v52, %v84_v53  ;;  %706 = vmatprep.subr.bf16.mxu1 %v817_v2 }
  0x3e   :  { %v97_v60 = vsel %vm93_vm7, %v81_v52, %v96_v57  ;;  %v100_v61 = vsel %vm94_vm5, %v87_v54, 920167782  ;;  %v104_v62 = vsel %vm94_vm5, %v90_v55, 1326507024  ;;  %v385_v55 = vld [vmem:[#allocation2 + $0x58] sm:$0xff] }
  0x3f   :  { %v101_v63 = vsel %vm93_vm7, %v84_v53, %v100_v61  ;;  %v105_v0 = vsel %vm93_vm7, %v87_v54, %v104_v62  ;;  %v98_v1 = vsel %vm92_vm6, %v95_v56, %v97_v60  ;;  %v384_v54 = vld [vmem:[#allocation2 + $0x50] sm:$0xff]  ;;  %v387_v60 = vld [vmem:[#allocation2 + $0x68] sm:$0xff]  ;;  %v389_v62 = vld [vmem:[#allocation2 + $0x78] sm:$0xff] }
  0x40   :  { %v102_v3 = vsel %vm92_vm6, %v99_v58, %v101_v63  ;;  %v106_v4 = vsel %vm92_vm6, %v103_v59, %v105_v0  ;;  %v114_v10 = vmul.u32 %v107_v50, %v98_v1  ;;  %v707_v57 = vpack.c.bf16 %v385_v55, %v384_v54  ;;  %v386_v59 = vld [vmem:[#allocation2 + $0x60] sm:$0xff]  ;;  %v469_v1 = vld [vmem:[#allocation4 + $0x8] sm:$0xff] }
  0x41   :  { %v918_v5 = vmul.u32.u64.low %v107_v50, %v106_v4  ;;  %v919_v7 = vmul.u32.u64.high %v107_v50, %v106_v4, %v918_v5  ;;  %v921_v8 = vmul.u32.u64.low %v107_v50, %v102_v3  ;;  %v922_v9 = vmul.u32.u64.high %v107_v50, %v102_v3, %v921_v8  ;;  %v468_v0 = vld [vmem:[#allocation4] sm:$0xff]  ;;  %v470_v3 = vld [vmem:[#allocation4 + $0x10] sm:$0xff] }
  0x42   :  { %708 = vmatpush3.bf16.msra.mxu1 %v707_v57  ;;  %v710_v61 = vpack.c.bf16 %v387_v60, %v386_v59  ;;  %v716_v4 = vpack.c.bf16 %v469_v1, %v468_v0  ;;  %v471_v5 = vld [vmem:[#allocation4 + $0x18] sm:$0xff] }
  0x43   :  { %vm116_vm8 = vc.u32 %v919_v7, %v921_v8  ;;  %v117_v11 = vadd.s32 1, %v922_v9  ;;  %v115_v23 = vadd.s32 %v921_v8, %v919_v7  ;;  %709 = vmatprep.subr.bf16.mxu1 %v817_v2  ;;  %v719_v7 = vpack.c.bf16 %v471_v5, %v470_v3  ;;  %v472_v8 = vld [vmem:[#allocation4 + $0x20] sm:$0xff] }
  0x44   :  { %717 = vmatpush3.bf16.msra.mxu0 %v716_v4 }
  0x45   :  { %v118_v12 = vsel %vm116_vm8, %v117_v11, %v922_v9  ;;  %718 = vmatprep.subr.bf16.mxu0 %v817_v2  ;;  %v473_v9 = vld [vmem:[#allocation4 + $0x28] sm:$0xff]  ;;  %v474_v11 = vld [vmem:[#allocation4 + $0x30] sm:$0xff] }
  0x46   :  { %v119_v13 = vadd.s32 %v118_v12, %v114_v10  ;;  %711 = vmatpush3.bf16.msra.mxu1 %v710_v61  ;;  %v722_v10 = vpack.c.bf16 %v473_v9, %v472_v8  ;;  %v475_v12 = vld [vmem:[#allocation4 + $0x38] sm:$0xff] }
  0x47   :  { %712 = vmatprep.subr.bf16.mxu1 %v817_v2 }
  0x48   :  { %v120_v14 = vadd.s32 536870912, %v119_v13  ;;  %720 = vmatpush3.bf16.msra.mxu0 %v719_v7 }
  0x49   :  { %721 = vmatprep.subr.bf16.mxu0 %v817_v2 }
  0x4a   :  { %v121_v15 = vshrl.u32 %v120_v14, 30  ;;  %v476_v14 = vld [vmem:[#allocation4 + $0x40] sm:$0xff] }
  0x4c   :  { %v122_v16 = vshll.u32 %v121_v15, 30  ;;  %v145_v36 = vsub.s32 4, %v121_v15  ;;  %723 = vmatpush3.bf16.msra.mxu0 %v722_v10 }
  0x4d   :  { %724 = vmatprep.subr.bf16.mxu0 %v817_v2 }
  0x4e   :  { %v123_v18 = vsub.s32 %v119_v13, %v122_v16  ;;  %v146_v39 = vsel %vm61_vm10, %v145_v36, %v121_v15  ;;  %v725_v13 = vpack.c.bf16 %v475_v12, %v474_v11  ;;  %v477_v15 = vld [vmem:[#allocation4 + $0x48] sm:$0xff] }
  0x4f   :  { %v148_v41 = vsel %vm60_vm11, 0, %v146_v39  ;;  %v728_v16 = vpack.c.bf16 %v477_v15, %v476_v14 }
  0x50   :  { %v125_v19 = vsub.s32 0, %v123_v18  ;;  %v255_v42 = vadd.s32 3, %v148_v41  ;;  %v152_v43 = vand.u32 3, %v148_v41  ;;  %726 = vmatpush3.bf16.msra.mxu0 %v725_v13 }
  0x51   :  { %727 = vmatprep.subr.bf16.mxu0 %v817_v2 }
  0x52   :  { %v569_v20 = vmin.u32 %v125_v19, %v123_v18  ;;  %v256_v44 = vand.u32 3, %v255_v42  ;;  %vm157_vm12 = vcmp.eq.s32.totalorder %v152_v43, 2  ;;  %vm154_vm14 = vcmp.eq.s32.totalorder %v152_v43, 0  ;;  %v479_v19 = vld [vmem:[#allocation4 + $0x58] sm:$0xff]  ;;  %v482_v42 = vld [vmem:[#allocation4 + $0x70] sm:$0xff] }
  0x53   :  { %vm153_vm0 = vcmp.lt.s32.totalorder %v152_v43, 2  ;;  %v483_v43 = vld [vmem:[#allocation4 + $0x78] sm:$0xff] }
  0x54   :  { %v127_v21 = vclz %v569_v20  ;;  %vm261_vm13 = vcmp.eq.s32.totalorder %v256_v44, 2  ;;  %vm258_vm15 = vcmp.eq.s32.totalorder %v256_v44, 0  ;;  %vm257_vm1 = vcmp.lt.s32.totalorder %v256_v44, 2  ;;  %729 = vmatpush3.bf16.msra.mxu0 %v728_v16 }
  0x55   :  { %730 = vmatprep.subr.bf16.mxu0 %v817_v2  ;;  %v737_v44 = vpack.c.bf16 %v483_v43, %v482_v42 }
  0x56   :  { %v570_v22 = vadd.s32 4294967294, %v127_v21  ;;  %v480_v21 = vld [vmem:[#allocation4 + $0x60] sm:$0xff] }
  0x58   :  { %vm571_vm9 = vcmp.lt.s32.totalorder %v570_v22, 0 }
  0x59   :  { %v130_v24 = vsel %vm571_vm9, 0, %v570_v22  ;;  %v481_v22 = vld [vmem:[#allocation4 + $0x68] sm:$0xff] }
  0x5a   :  { %v131_v25 = vsub.s32 32, %v130_v24  ;;  %v132_v26 = vshll.u32 %v123_v18, %v130_v24  ;;  %v135_v27 = vsub.s32 4294967266, %v130_v24  ;;  %v478_v18 = vld [vmem:[#allocation4 + $0x50] sm:$0xff]  ;;  %v274_v24 = vlaneseq }
  0x5b   :  { %v731_v20 = vpack.c.bf16 %v479_v19, %v478_v18 }
  0x5c   :  { %v133_v28 = vshrl.u32 %v115_v23, %v131_v25  ;;  %v136_v29 = vadd.s32 127, %v135_v27  ;;  %v734_v23 = vpack.c.bf16 %v481_v22, %v480_v21  ;;  %v275_v25 = vshrl.u32 %v274_v24, 7  ;;  %v266_v27 = vld [vmem:[%s957_s3] sm:$0xff] }
  0x5d   :  { %732 = vmatpush3.bf16.msra.mxu0 %v731_v20 }
  0x5e   :  { %v134_v30 = vor.u32 %v133_v28, %v132_v26  ;;  %v137_v31 = vshll.u32 %v136_v29, 23  ;;  %733 = vmatprep.subr.bf16.mxu0 %v817_v2  ;;  %v276_v26 = vsub.s32 0, %v275_v25  ;;  %v364_v29 = vsub.s32 1, %v275_v25 }
  0x60   :  { %v138_v32 = vor.u32 4788187, %v137_v31  ;;  %v141_v33 = vcvt.s32.f32 %v134_v30  ;;  %v277_v28 = vrot.slane %v266_v27, %v276_v26 }
  0x61   :  { %735 = vmatpush3.bf16.msra.mxu0 %v734_v23 }
  0x62   :  { %v139_v34 = vand.u32 2147483647, %v138_v32  ;;  %736 = vmatprep.subr.bf16.mxu0 %v817_v2 }
  0x64   :  { %v142_v35 = vmul.f32 %v141_v33, %v139_v34  ;;  %v365_v33 = vrot.slane %v266_v27, %v364_v29  ;;  %v370_v34 = vsub.s32 2, %v275_v25 }
  0x65   :  { %738 = vmatpush3.bf16.msra.mxu0 %v737_v44 }
  0x66   :  { %v143_v37 = vxor.u32 2147483648, %v142_v35  ;;  %v371_v39 = vrot.slane %v266_v27, %v370_v34 }
  0x68   :  { %v144_v38 = vsel %vm61_vm10, %v143_v37, %v142_v35 }
  0x69   :  { %v147_v40 = vsel %vm60_vm11, %v905_v6, %v144_v38  ;;  %v388_v6 = vld [vmem:[#allocation2 + $0x70] sm:$0xff] }
  0x6a   :  { %758 = vcosq.f32 %v147_v40  ;;  %v713_v63 = vpack.c.bf16 %v389_v62, %v388_v6 }
  0x6b   :  { %760 = vsinq.f32 %v147_v40 }
  0x6c   :  { %714 = vmatpush3.bf16.msra.mxu1 %v713_v63 }
  0x74   :  { %v759_v45 = vpop.eup %758 }
  0x75   :  { %v761_v46 = vpop.eup %760  ;;  %v158_v47 = vxor.u32 2147483648, %v759_v45 }
  0x76   :  { %v155_v17 = vxor.u32 2147483648, %v761_v46 }
  0x77   :  { %v159_v48 = vsel %vm157_vm12, %v158_v47, %v761_v46  ;;  %v263_v49 = vsel %vm261_vm13, %v158_v47, %v761_v46 }
  0x78   :  { %v156_v50 = vsel %vm154_vm14, %v759_v45, %v155_v17  ;;  %v260_v51 = vsel %vm258_vm15, %v759_v45, %v155_v17  ;;  %v578_v45 = vld [vmem:[%s959_s5] ss:$0 sm:$0xff] }
  0x79   :  { %v160_v52 = vsel %vm153_vm0, %v156_v50, %v159_v48  ;;  %v264_v53 = vsel %vm257_vm1, %v260_v51, %v263_v49  ;;  %v579_v49 = vld [vmem:[%s961_s7] ss:$0 sm:$0xff] }
  0x7a   :  { %v161_v56 = vsel %vm151_vm2, nan, %v160_v52  ;;  %v265_v58 = vsel %vm151_vm2, nan, %v264_v53 }
  0x7b   :  { %271 = vperm.xlu0 %757, %v161_v56  }
  0x7f   :  { %359 = vperm.xlu0 %757, %v265_v58  }
  0xfa   :  { %v272_v30 = vpop.permute.xlu0 %271 }
  0xfb   :  { %v278_v31 = vmul.f32 %v277_v28, %v272_v30 }
  0xfc   :  { %v353_v32 = vpop.f32.mrb[0].mxu0 }
  0xfd   :  { %v620_v35 = vpop.f32.mrb[1].mxu0  ;;  %v354_v36 = vadd.f32 %v353_v32, %v278_v31 }
  0xfe   :  { %v360_v37 = vpop.permute.xlu0 %359 }
  0xff   :  { %v366_v38 = vmul.f32 %v365_v33, %v360_v37 }
 0x101   :  { %v367_v2 = vadd.f32 %v366_v38, %v354_v36 }
 0x103   :  { %v372_v40 = vadd.f32 %v371_v39, %v367_v2 }
 0x105   :  { %v373_v41 = vmax.f32 %v372_v40, 0.0 }
 0x107   :  { %654 = vmatmul.mubr.f32.vlgmr.msra.gmra.mrb[0].mxu1 %v373_v41 }
 0x1da   :  { %v463_v46 = vpop.f32.mrb[0].mxu1 }
 0x1db   :  { %v464_v47 = vadd.f32 %v578_v45, %v463_v46  ;;  %v655_v17 = vpop.f32.mrb[1].mxu1 }
 0x1dd   :  { %v467_v48 = vmax.f32 %v464_v47, 0.0 }
 0x1df   :  { %689 = vmatmul.mubr.f32.vlgmr.msra.gmra.mrb[2].mxu0 %v467_v48 }
 0x2b2   :  { %v557_v50 = vpop.f32.mrb[2].mxu0 }
 0x2b3   :  { %v558_v51 = vadd.f32 %v579_v49, %v557_v50  ;;  %v690_v52 = vpop.f32.mrb[3].mxu0 }
 0x2b5   :  { %561 = vst [vmem:[%s962_s8] sm:$0xff] %v558_v51 }
 0x2b6   :  { %566 = vsyncpa [#allocation3], 1 }
 0x2b7   :  { %567 = vsyncpa [#allocation5], 1 }

</bundles_post_ra>
